<compile_context>
chip_gen: v7x
topology: tpu7x:2x2x1
jax: 0.10.0
libtpu: 0.0.40
codegen_flags: <defaults>
</compile_context>

<pallas_src>
import jax
import jax.numpy as jnp
from jax.experimental import pallas as pl
from jax.experimental.pallas import tpu as pltpu


def _round_up(x, m):
    return (x + m - 1) // m * m


def _cdiv(a, b):
    return -(-a // b)


def _leaky_relu(x, slope=0.2):
    return jnp.where(x > 0, x, slope * x)


def _choose_tk(hw):
    """K tile over the flattened spectrogram features."""
    if hw <= 4096:
        return hw                      # one resident K tile: no streaming, no padding
    for tk in (4096, 2048, 1024, 512, 256, 128):
        if hw % tk == 0:
            return tk                  # streamed, no K padding needed
    return 2048                        # ragged hw: stream with a zero-padded tail


def _choose_tile_b(B):
    """Batch tile: full batch for small B (no pad); otherwise >=2 tiles of <=512 rows."""
    if B <= 128:
        return B
    n_tiles = max(2, _cdiv(B, 512))
    return _round_up(_cdiv(B, n_tiles), 8)


# ----------------------------------------------------------------------------------
# Kernel
# ----------------------------------------------------------------------------------
def discriminator_kernel(x_ref, g_ref, w1s_ref, w1g_ref, b1_ref,
                         w2_ref, b2_ref, w3_ref, b3_ref, o_ref, acc_ref):
    """Grid = (batch_tile b [parallel], k over spectrogram features [arbitrary])."""
    k = pl.program_id(1)

    @pl.when(k == 0)
    def _():
        # Initialise the layer-1 accumulator with the genre contribution
        # (saves the zero fill and shortens the last-k epilogue).
        acc_ref[...] = jnp.dot(g_ref[...].astype(jnp.bfloat16), w1g_ref[...],
                               preferred_element_type=jnp.float32)

    # Streamed layer-1 partial product: f32 activations cast to bf16 in-kernel,
    # bf16 weights, f32 MXU accumulation.
    acc_ref[...] += jnp.dot(x_ref[...].astype(jnp.bfloat16), w1s_ref[...],
                            preferred_element_type=jnp.float32)

    @pl.when(k == pl.num_programs(1) - 1)
    def _():
        h1 = _leaky_relu(acc_ref[...] + b1_ref[...])

        h2 = jnp.dot(h1.astype(jnp.bfloat16), w2_ref[...],
                     preferred_element_type=jnp.float32)
        h2 = _leaky_relu(h2 + b2_ref[...])

        h3 = jnp.dot(h2.astype(jnp.bfloat16), w3_ref[...],
                     preferred_element_type=jnp.float32)
        h3 = h3 + b3_ref[...]

        # Sigmoid in f32 (exp goes to the EUP).  Lane-dense 128-wide store.
        o_ref[...] = 1.0 / (1.0 + jnp.exp(-h3))


# ----------------------------------------------------------------------------------
# One-time weight preparation (hoisted out of the per-call forward path)
# ----------------------------------------------------------------------------------
def prepare_discriminator_params(params, input_shape, genre_dim):
    """params: PyTorch-layout-equivalent, W stored as (in, out):
        (w1 (H*W+G, 512), b1 (1,512), w2 (512,256), b2 (1,256), w3 (256,1), b3 (1,1))
    Returns a dict of pre-cast / pre-padded device arrays + tiling metadata."""
    H, W = input_shape[1], input_shape[2]
    hw = H * W
    w1, b1, w2, b2, w3, b3 = params

    tk = _choose_tk(hw)
    hw_pad = _round_up(hw, tk)
    n_out_pad = 128                          # lane-dense final layer

    w1_spec = w1[:hw].astype(jnp.bfloat16)
    if hw_pad != hw:                          # zero rows -> padded K tail contributes 0
        w1_spec = jnp.zeros((hw_pad, 512), jnp.bfloat16).at[:hw].set(w1_spec)
    w1_genre = w1[hw:hw + genre_dim].astype(jnp.bfloat16)
    w2_b = w2.astype(jnp.bfloat16)
    w3_p = jnp.zeros((256, n_out_pad), jnp.bfloat16).at[:, :1].set(
        w3.astype(jnp.bfloat16))
    b1_f = b1.reshape(1, 512).astype(jnp.float32)
    b2_f = b2.reshape(1, 256).astype(jnp.float32)
    b3_p = jnp.zeros((1, n_out_pad), jnp.float32).at[:, :1].set(
        b3.reshape(1, 1).astype(jnp.float32))

    return dict(w1_spec=w1_spec, w1_genre=w1_genre, b1=b1_f, w2=w2_b, b2=b2_f,
                w3=w3_p, b3=b3_p, hw=hw, hw_pad=hw_pad, tk=tk,
                genre_dim=genre_dim, n_out_pad=n_out_pad)


# ----------------------------------------------------------------------------------
# Forward
# ----------------------------------------------------------------------------------
def discriminator_forward(spectrogram, genre, prepared):
    """spectrogram: (B, H, W) f32, genre: (B, genre_dim) f32.
    Returns (B, 1) f32 in (0, 1)."""
    B = spectrogram.shape[0]
    hw, hw_pad, tk = prepared["hw"], prepared["hw_pad"], prepared["tk"]
    g_dim = prepared["genre_dim"]
    n_out = prepared["n_out_pad"]

    tile_b = _choose_tile_b(B)
    b_pad = _round_up(B, tile_b)
    num_b = b_pad // tile_b
    num_k = hw_pad // tk

    # Activations stay f32 (bf16 cast happens in-kernel).  Pad only when the tiles
    # do not divide the shapes (common case: no wrapper copy at all).
    x = spectrogram.reshape(B, hw)
    g = genre
    if b_pad != B or hw_pad != hw:
        x = jnp.zeros((b_pad, hw_pad), x.dtype).at[:B, :hw].set(x)
    if b_pad != B:
        g = jnp.zeros((b_pad, g_dim), g.dtype).at[:B].set(g)

    # ---- VMEM budget from the actual (double-buffered) block sizes ---------------
    vmem_needed = (
        2 * tile_b * tk * 4            # x block (f32)
        + 2 * tile_b * g_dim * 4       # genre block (f32)
        + 2 * tk * 512 * 2             # W1_spec block (bf16)
        + 2 * g_dim * 512 * 2          # W1_genre (bf16)
        + 2 * 512 * 4                  # b1
        + 2 * 512 * 256 * 2            # W2
        + 2 * 256 * 4                  # b2
        + 2 * 256 * n_out * 2          # W3 (lane-padded)
        + 2 * n_out * 4                # b3
        + 2 * tile_b * n_out * 4       # output block
        + tile_b * 512 * 4)            # accumulator scratch
    vmem_limit = int(min(100 * 1024 * 1024,
                         max(16 * 1024 * 1024, vmem_needed * 5 // 4 + (2 << 20))))

    # ---- grid / specs --------------------------------------------------------------
    grid_spec = pltpu.PrefetchScalarGridSpec(
        num_scalar_prefetch=0,
        grid=(num_b, num_k),
        in_specs=[
            pl.BlockSpec((tile_b, tk),     lambda b, k: (b, k)),   # x (streamed K)
            pl.BlockSpec((tile_b, g_dim),  lambda b, k: (b, 0)),   # genre
            pl.BlockSpec((tk, 512),        lambda b, k: (k, 0)),   # W1_spec (streamed)
            pl.BlockSpec((g_dim, 512),     lambda b, k: (0, 0)),   # W1_genre (resident)
            pl.BlockSpec((1, 512),         lambda b, k: (0, 0)),   # b1
            pl.BlockSpec((512, 256),       lambda b, k: (0, 0)),   # W2 (resident)
            pl.BlockSpec((1, 256),         lambda b, k: (0, 0)),   # b2
            pl.BlockSpec((256, n_out),     lambda b, k: (0, 0)),   # W3 (lane-padded)
            pl.BlockSpec((1, n_out),       lambda b, k: (0, 0)),   # b3 (lane-padded)
        ],
        out_specs=pl.BlockSpec((tile_b, n_out), lambda b, k: (b, 0)),
        scratch_shapes=[pltpu.VMEM((tile_b, 512), jnp.float32)],   # layer-1 accumulator
    )

    # W1_spec is re-streamed once per batch tile only when there is a real K loop.
    w1_spec_streams = num_b if num_k > 1 else 1
    cost = pl.CostEstimate(
        flops=2 * b_pad * (hw_pad * 512 + g_dim * 512 + 512 * 256 + 256 * n_out),
        transcendentals=b_pad * n_out,
        bytes_accessed=(b_pad * hw_pad * 4 + b_pad * g_dim * 4
                        + hw_pad * 512 * 2 * w1_spec_streams
                        + g_dim * 512 * 2 + 512 * 4 + 512 * 256 * 2 + 256 * 4
                        + 256 * n_out * 2 + n_out * 4
                        + b_pad * n_out * 4),
    )

    out_pad = pl.pallas_call(
        discriminator_kernel,
        out_shape=jax.ShapeDtypeStruct((b_pad, n_out), jnp.float32),
        grid_spec=grid_spec,
        compiler_params=pltpu.CompilerParams(
            dimension_semantics=("parallel", "arbitrary"),
            vmem_limit_bytes=vmem_limit,
        ),
        cost_estimate=cost,
    )(x, g, prepared["w1_spec"], prepared["w1_genre"], prepared["b1"],
      prepared["w2"], prepared["b2"], prepared["w3"], prepared["b3"])

    return out_pad[:B, :1]


# ----------------------------------------------------------------------------------
# Init (nn.Linear-style) + self-test
# ----------------------------------------------------------------------------------
def init_params(key, input_dim):
    """U(-1/sqrt(fan_in), 1/sqrt(fan_in)); W stored as (in, out)."""
    dims = [(input_dim, 512), (512, 256), (256, 1)]
    params = []
    for (fan_in, fan_out) in dims:
        key, kw, kb = jax.random.split(key, 3)
        bound = 1.0 / jnp.sqrt(float(fan_in))
        w = jax.random.uniform(kw, (fan_in, fan_out), jnp.float32, -bound, bound)
        b = jax.random.uniform(kb, (1, fan_out), jnp.float32, -bound, bound)
        params += [w, b]
    return tuple(params)


if __name__ == "__main__":
    # Small shapes consistent with the module: input_shape = (B, H, W),
    # input_dim = H * W + genre_dim.
    B, H, W = 2, 16, 16
    genre_dim = 8
    input_dim = H * W + genre_dim  # 264

    key = jax.random.PRNGKey(0)
    k_spec, k_genre, k_params = jax.random.split(key, 3)

    spectrogram = jax.random.normal(k_spec, (B, H, W), dtype=jnp.float32)
    genre = jax.random.normal(k_genre, (B, genre_dim), dtype=jnp.float32)
    params = init_params(k_params, input_dim)

    # Weight prep is done once (hoisted out of the per-call forward).
    prepared = prepare_discriminator_params(params, (B, H, W), genre_dim)

    out = discriminator_forward(spectrogram, genre, prepared)
    out = jax.block_until_ready(out)

    # Sanity: output shape (B, 1), values in (0, 1) from sigmoid.
    assert out.shape == (B, 1)
    assert bool(jnp.all((out > 0.0) & (out < 1.0)))

    # Pure-JAX reference mirroring the kernel's bf16-weight / f32-accumulate math.
    w1, b1, w2, b2, w3, b3 = params
    x_cat = jnp.concatenate(
        [spectrogram.reshape(B, -1).astype(jnp.bfloat16), genre.astype(jnp.bfloat16)],
        axis=1)
    h = jnp.dot(x_cat, w1.astype(jnp.bfloat16),
                preferred_element_type=jnp.float32) + b1
    h = jnp.where(h > 0, h, 0.2 * h)
    h = jnp.dot(h.astype(jnp.bfloat16), w2.astype(jnp.bfloat16),
                preferred_element_type=jnp.float32) + b2
    h = jnp.where(h > 0, h, 0.2 * h)
    ref = jax.nn.sigmoid(jnp.dot(h.astype(jnp.bfloat16), w3.astype(jnp.bfloat16),
                                 preferred_element_type=jnp.float32) + b3)
    assert bool(jnp.allclose(out, ref, atol=2e-3, rtol=2e-3)), (
        f"max abs err {float(jnp.max(jnp.abs(out - ref)))}")

    print("KERNEL_OK")
</pallas_src>

<mosaic_0001>
module attributes {stable_mosaic.version = 11 : i64} {
  func.func @discriminator_kernel(%arg0: i32, %arg1: i32, %arg2: memref<2x256xf32, #tpu.memory_space<vmem>>, %arg3: memref<2x8xf32, #tpu.memory_space<vmem>>, %arg4: memref<256x512xbf16, #tpu.memory_space<vmem>>, %arg5: memref<8x512xbf16, #tpu.memory_space<vmem>>, %arg6: memref<1x512xf32, #tpu.memory_space<vmem>>, %arg7: memref<512x256xbf16, #tpu.memory_space<vmem>>, %arg8: memref<1x256xf32, #tpu.memory_space<vmem>>, %arg9: memref<256x128xbf16, #tpu.memory_space<vmem>>, %arg10: memref<1x128xf32, #tpu.memory_space<vmem>>, %arg11: memref<2x128xf32, #tpu.memory_space<vmem>>, %arg12: memref<2x512xf32, #tpu.memory_space<vmem>>) attributes {dimension_semantics = [#tpu.dimension_semantics<parallel>, #tpu.dimension_semantics<arbitrary>], iteration_bounds = array<i64: 1, 1>, scalar_prefetch = 0 : i64, scratch_operands = 1 : i64, tpu.core_type = #tpu.core_type<tc>, window_params = [{transform_indices = @transform_0, window_bounds = array<i64: 2, 256>}, {transform_indices = @transform_1, window_bounds = array<i64: 2, 8>}, {transform_indices = @transform_2, window_bounds = array<i64: 256, 512>}, {pipeline_mode = #tpu.pipeline_mode<synchronous>, transform_indices = @transform_3, window_bounds = array<i64: 8, 512>}, {pipeline_mode = #tpu.pipeline_mode<synchronous>, transform_indices = @transform_4, window_bounds = array<i64: 1, 512>}, {pipeline_mode = #tpu.pipeline_mode<synchronous>, transform_indices = @transform_5, window_bounds = array<i64: 512, 256>}, {pipeline_mode = #tpu.pipeline_mode<synchronous>, transform_indices = @transform_6, window_bounds = array<i64: 1, 256>}, {pipeline_mode = #tpu.pipeline_mode<synchronous>, transform_indices = @transform_7, window_bounds = array<i64: 256, 128>}, {pipeline_mode = #tpu.pipeline_mode<synchronous>, transform_indices = @transform_8, window_bounds = array<i64: 1, 128>}, {transform_indices = @transform_9, window_bounds = array<i64: 2, 128>}]} {
    %c0_i32 = arith.constant 0 : i32
    %0 = arith.cmpi eq, %arg1, %c0_i32 : i32
    %1 = arith.extui %0 : i1 to i32
    %c0_i32_0 = arith.constant 0 : i32
    %2 = arith.cmpi ne, %1, %c0_i32_0 : i32
    scf.if %2 {
      %c0_10 = arith.constant 0 : index
      %c0_11 = arith.constant 0 : index
      %13 = vector.load %arg3[%c0_10, %c0_11] : memref<2x8xf32, #tpu.memory_space<vmem>>, vector<2x8xf32>
      %14 = arith.truncf %13 : vector<2x8xf32> to vector<2x8xbf16>
      %c0_12 = arith.constant 0 : index
      %c0_13 = arith.constant 0 : index
      %15 = vector.load %arg5[%c0_12, %c0_13] : memref<8x512xbf16, #tpu.memory_space<vmem>>, vector<8x512xbf16>
      %cst_14 = arith.constant dense<0.000000e+00> : vector<2x512xf32>
      %16 = tpu.matmul %14, %15, %cst_14 {dimension_numbers = #tpu.dot_dimension_numbers<[1], [0], [0], [1], [0, 0, 1, 1], [], []>} : vector<2x8xbf16>, vector<8x512xbf16>, vector<2x512xf32> -> vector<2x512xf32>
      %c0_15 = arith.constant 0 : index
      %c0_16 = arith.constant 0 : index
      %17 = vector.load %arg12[%c0_15, %c0_16] : memref<2x512xf32, #tpu.memory_space<vmem>>, vector<2x512xf32>
      tpu.vector_store %arg12[%c0_15, %c0_16], %16 {strides = array<i32>} : memref<2x512xf32, #tpu.memory_space<vmem>>, vector<2x512xf32>,
    } else {
    }
    %c0 = arith.constant 0 : index
    %c0_1 = arith.constant 0 : index
    %3 = vector.load %arg12[%c0, %c0_1] : memref<2x512xf32, #tpu.memory_space<vmem>>, vector<2x512xf32>
    %c0_2 = arith.constant 0 : index
    %c0_3 = arith.constant 0 : index
    %4 = vector.load %arg2[%c0_2, %c0_3] : memref<2x256xf32, #tpu.memory_space<vmem>>, vector<2x256xf32>
    %5 = arith.truncf %4 : vector<2x256xf32> to vector<2x256xbf16>
    %c0_4 = arith.constant 0 : index
    %c0_5 = arith.constant 0 : index
    %6 = vector.load %arg4[%c0_4, %c0_5] : memref<256x512xbf16, #tpu.memory_space<vmem>>, vector<256x512xbf16>
    %cst = arith.constant dense<0.000000e+00> : vector<2x512xf32>
    %7 = tpu.matmul %5, %6, %cst {dimension_numbers = #tpu.dot_dimension_numbers<[1], [0], [0], [1], [0, 0, 1, 1], [], []>} : vector<2x256xbf16>, vector<256x512xbf16>, vector<2x512xf32> -> vector<2x512xf32>
    %8 = arith.addf %3, %7 : vector<2x512xf32>
    %c0_6 = arith.constant 0 : index
    %c0_7 = arith.constant 0 : index
    %9 = vector.load %arg12[%c0_6, %c0_7] : memref<2x512xf32, #tpu.memory_space<vmem>>, vector<2x512xf32>
    tpu.vector_store %arg12[%c0_6, %c0_7], %8 {strides = array<i32>} : memref<2x512xf32, #tpu.memory_space<vmem>>, vector<2x512xf32>,
    %c0_i32_8 = arith.constant 0 : i32
    %10 = arith.cmpi eq, %arg1, %c0_i32_8 : i32
    %11 = arith.extui %10 : i1 to i32
    %c0_i32_9 = arith.constant 0 : i32
    %12 = arith.cmpi ne, %11, %c0_i32_9 : i32
    scf.if %12 {
      %c0_10 = arith.constant 0 : index
      %c0_11 = arith.constant 0 : index
      %13 = vector.load %arg12[%c0_10, %c0_11] : memref<2x512xf32, #tpu.memory_space<vmem>>, vector<2x512xf32>
      %c0_12 = arith.constant 0 : index
      %c0_13 = arith.constant 0 : index
      %14 = vector.load %arg6[%c0_12, %c0_13] : memref<1x512xf32, #tpu.memory_space<vmem>>, vector<1x512xf32>
      %15 = vector.broadcast %14 : vector<1x512xf32> to vector<2x512xf32>
      %16 = arith.addf %13, %15 : vector<2x512xf32>
      %cst_14 = arith.constant 0.000000e+00 : f32
      %17 = vector.broadcast %cst_14 : f32 to vector<2x512xf32>
      %18 = arith.cmpf ogt, %16, %17 : vector<2x512xf32>
      %cst_15 = arith.constant 2.000000e-01 : f32
      %19 = vector.broadcast %cst_15 : f32 to vector<2x512xf32>
      %20 = arith.mulf %19, %16 : vector<2x512xf32>
      %21 = arith.select %18, %16, %20 : vector<2x512xi1>, vector<2x512xf32>
      %22 = arith.truncf %21 : vector<2x512xf32> to vector<2x512xbf16>
      %c0_16 = arith.constant 0 : index
      %c0_17 = arith.constant 0 : index
      %23 = vector.load %arg7[%c0_16, %c0_17] : memref<512x256xbf16, #tpu.memory_space<vmem>>, vector<512x256xbf16>
      %cst_18 = arith.constant dense<0.000000e+00> : vector<2x256xf32>
      %24 = tpu.matmul %22, %23, %cst_18 {dimension_numbers = #tpu.dot_dimension_numbers<[1], [0], [0], [1], [0, 0, 1, 1], [], []>} : vector<2x512xbf16>, vector<512x256xbf16>, vector<2x256xf32> -> vector<2x256xf32>
      %c0_19 = arith.constant 0 : index
      %c0_20 = arith.constant 0 : index
      %25 = vector.load %arg8[%c0_19, %c0_20] : memref<1x256xf32, #tpu.memory_space<vmem>>, vector<1x256xf32>
      %26 = vector.broadcast %25 : vector<1x256xf32> to vector<2x256xf32>
      %27 = arith.addf %24, %26 : vector<2x256xf32>
      %cst_21 = arith.constant 0.000000e+00 : f32
      %28 = vector.broadcast %cst_21 : f32 to vector<2x256xf32>
      %29 = arith.cmpf ogt, %27, %28 : vector<2x256xf32>
      %cst_22 = arith.constant 2.000000e-01 : f32
      %30 = vector.broadcast %cst_22 : f32 to vector<2x256xf32>
      %31 = arith.mulf %30, %27 : vector<2x256xf32>
      %32 = arith.select %29, %27, %31 : vector<2x256xi1>, vector<2x256xf32>
      %33 = arith.truncf %32 : vector<2x256xf32> to vector<2x256xbf16>
      %c0_23 = arith.constant 0 : index
      %c0_24 = arith.constant 0 : index
      %34 = vector.load %arg9[%c0_23, %c0_24] : memref<256x128xbf16, #tpu.memory_space<vmem>>, vector<256x128xbf16>
      %cst_25 = arith.constant dense<0.000000e+00> : vector<2x128xf32>
      %35 = tpu.matmul %33, %34, %cst_25 {dimension_numbers = #tpu.dot_dimension_numbers<[1], [0], [0], [1], [0, 0, 1, 1], [], []>} : vector<2x256xbf16>, vector<256x128xbf16>, vector<2x128xf32> -> vector<2x128xf32>
      %c0_26 = arith.constant 0 : index
      %c0_27 = arith.constant 0 : index
      %36 = vector.load %arg10[%c0_26, %c0_27] : memref<1x128xf32, #tpu.memory_space<vmem>>, vector<1x128xf32>
      %37 = vector.broadcast %36 : vector<1x128xf32> to vector<2x128xf32>
      %38 = arith.addf %35, %37 : vector<2x128xf32>
      %cst_28 = arith.constant 0.000000e+00 : f32
      %39 = vector.broadcast %cst_28 : f32 to vector<2x128xf32>
      %40 = arith.subf %39, %38 : vector<2x128xf32>
      %41 = math.exp %40 : vector<2x128xf32>
      %cst_29 = arith.constant 1.000000e+00 : f32
      %42 = vector.broadcast %cst_29 : f32 to vector<2x128xf32>
      %43 = arith.addf %42, %41 : vector<2x128xf32>
      %cst_30 = arith.constant 1.000000e+00 : f32
      %44 = vector.broadcast %cst_30 : f32 to vector<2x128xf32>
      %45 = arith.divf %44, %43 : vector<2x128xf32>
      %c0_31 = arith.constant 0 : index
      %c0_32 = arith.constant 0 : index
      %46 = vector.load %arg11[%c0_31, %c0_32] : memref<2x128xf32, #tpu.memory_space<vmem>>, vector<2x128xf32>
      tpu.vector_store %arg11[%c0_31, %c0_32], %45 {strides = array<i32>} : memref<2x128xf32, #tpu.memory_space<vmem>>, vector<2x128xf32>,
    } else {
    }
    return
  }
  func.func @transform_0(%arg0: i32, %arg1: i32) -> (i32, i32) {
    %c0_i32 = arith.constant 0 : i32
    return %arg0, %arg1 : i32, i32
  }
  func.func @transform_1(%arg0: i32, %arg1: i32) -> (i32, i32) {
    %c0_i32 = arith.constant 0 : i32
    %c0_i32_0 = arith.constant 0 : i32
    return %arg0, %c0_i32 : i32, i32
  }
  func.func @transform_2(%arg0: i32, %arg1: i32) -> (i32, i32) {
    %c0_i32 = arith.constant 0 : i32
    %c0_i32_0 = arith.constant 0 : i32
    return %arg1, %c0_i32 : i32, i32
  }
  func.func @transform_3(%arg0: i32, %arg1: i32) -> (i32, i32) {
    %c0_i32 = arith.constant 0 : i32
    %c0_i32_0 = arith.constant 0 : i32
    %c0_i32_1 = arith.constant 0 : i32
    return %c0_i32, %c0_i32_0 : i32, i32
  }
  func.func @transform_4(%arg0: i32, %arg1: i32) -> (i32, i32) {
    %c0_i32 = arith.constant 0 : i32
    %c0_i32_0 = arith.constant 0 : i32
    %c0_i32_1 = arith.constant 0 : i32
    return %c0_i32, %c0_i32_0 : i32, i32
  }
  func.func @transform_5(%arg0: i32, %arg1: i32) -> (i32, i32) {
    %c0_i32 = arith.constant 0 : i32
    %c0_i32_0 = arith.constant 0 : i32
    %c0_i32_1 = arith.constant 0 : i32
    return %c0_i32, %c0_i32_0 : i32, i32
  }
  func.func @transform_6(%arg0: i32, %arg1: i32) -> (i32, i32) {
    %c0_i32 = arith.constant 0 : i32
    %c0_i32_0 = arith.constant 0 : i32
    %c0_i32_1 = arith.constant 0 : i32
    return %c0_i32, %c0_i32_0 : i32, i32
  }
  func.func @transform_7(%arg0: i32, %arg1: i32) -> (i32, i32) {
    %c0_i32 = arith.constant 0 : i32
    %c0_i32_0 = arith.constant 0 : i32
    %c0_i32_1 = arith.constant 0 : i32
    return %c0_i32, %c0_i32_0 : i32, i32
  }
  func.func @transform_8(%arg0: i32, %arg1: i32) -> (i32, i32) {
    %c0_i32 = arith.constant 0 : i32
    %c0_i32_0 = arith.constant 0 : i32
    %c0_i32_1 = arith.constant 0 : i32
    return %c0_i32, %c0_i32_0 : i32, i32
  }
  func.func @transform_9(%arg0: i32, %arg1: i32) -> (i32, i32) {
    %c0_i32 = arith.constant 0 : i32
    %c0_i32_0 = arith.constant 0 : i32
    return %arg0, %c0_i32 : i32, i32
  }
}

</mosaic_0001>

<bundles_post_ra>
// kernel: tpu_custom_call.1
= control target key start
LH: loop header
LB: loop body
LE: loop exit
PB: predicated region body
PF: predicated region fallthrough
CT: control target
= control target key end

     0   :  { %14 = vsyncpa [#allocation4], 0  ;;  %s2251_s0 = inlined_call_operand.hbm [shape: f32[2,256], index: 0, kind: input, shape index: {}]   ;;  %s2252_s1 = inlined_call_operand.vmem [shape: f32[2,8], index: 1, kind: input, shape index: {}]   ;;  %s2253_s2 = inlined_call_operand.hbm [shape: bf16[256,512], index: 2, kind: input, shape index: {}]   ;;  %s2254_s3 = inlined_call_operand.hbm [shape: bf16[8,512], index: 3, kind: input, shape index: {}]   ;;  %s2255_s4 = inlined_call_operand.vmem [shape: f32[1,512], index: 4, kind: input, shape index: {}]   ;;  %s2256_s5 = inlined_call_operand.hbm [shape: bf16[512,256], index: 5, kind: input, shape index: {}]   ;;  %s2257_s6 = inlined_call_operand.vmem [shape: f32[1,256], index: 6, kind: input, shape index: {}]   ;;  %s2258_s7 = inlined_call_operand.hbm [shape: bf16[256,128], index: 7, kind: input, shape index: {}]   ;;  %s2259_s8 = inlined_call_operand.vmem [shape: f32[1,128], index: 8, kind: input, shape index: {}]   ;;  %s2260_s9 = inlined_call_operand.hbm [shape: f32[2,128], index: 9, kind: output, shape index: {}]  }
   0x1   :  { %15 = vsyncpa [#allocation7], 0 }
   0x2   :  { %16 = vsyncpa [#allocation10], 0 }
   0x3   :  { %17 = vsyncpa [#allocation5], 0  ;;  %s2050_s30 = smov [#allocation6]   ;;  %s1910_s13 = scalar_lea.hbm %s2253_s2, 8192 }
   0x4   :  { %s35_s10 = sshll.u32 %s2050_s30, 4  ;;  %p1911_p0 = scmp.ne.s32.totalorder %s2253_s2, %s1910_s13  ;;  %s36_s10 = int_to_ptr.vmem [resolvable:$true] %s35_s10 }
   0x5   :  { %p1914_p1 = scmp.lt.u32.totalorder %s1910_s13, %s2253_s2 }
   0x7   :  { %p1916_p2 = pnand %p1914_p1, %p1911_p0 }
   0x9   :  { %1919 = shalt.err (!%p1916_p2)
}
   0xa   :  { %s1920_s18 = scalar_lea.vmem %s36_s10, 8192  ;;  %p1925_p4 = scmp.lt.s32.totalorder %s36_s10, %s36_s10 }
   0xb   :  { %p1921_p3 = scmp.ne.s32.totalorder %s36_s10, %s1920_s18  ;;  %p1926_p5 = scmp.lt.s32.totalorder %s1920_s18, %s1920_s18 }
   0xd   :  { %p1927_p6 = por %p1926_p5, %p1925_p4 }
   0xf   :  { %p1928_p7 = pnand %p1927_p6, %p1921_p3 }
  0x11   :  { %1931 = shalt.err (!%p1928_p7)
}
  0x12   :  { %s2051_s19 = smov 256   ;;  %s2052_s20 = smov 16  }
  0x13   :  { %41 = dma.hbm_to_vmem [thread:$0]  %s2253_s2, 8192, %s36_s10, [#allocation7], %s2051_s19, %s2051_s19, %s2052_s20  }
  0x14   :  { %s2053_s23 = smov [#allocation9]   ;;  %s1932_s27 = scalar_lea.hbm %s2256_s5, 8192 }
  0x15   :  { %s59_s24 = sshll.u32 %s2053_s23, 4  ;;  %p1933_p8 = scmp.ne.s32.totalorder %s2256_s5, %s1932_s27  ;;  %s60_s24 = int_to_ptr.vmem [resolvable:$true] %s59_s24 }
  0x16   :  { %p1936_p9 = scmp.lt.u32.totalorder %s1932_s27, %s2256_s5 }
  0x18   :  { %p1938_p10 = pnand %p1936_p9, %p1933_p8 }
  0x1a   :  { %1941 = shalt.err (!%p1938_p10)
}
  0x1b   :  { %s1942_s12 = scalar_lea.vmem %s60_s24, 8192  ;;  %p1947_p12 = scmp.lt.s32.totalorder %s60_s24, %s60_s24 }
  0x1c   :  { %p1943_p11 = scmp.ne.s32.totalorder %s60_s24, %s1942_s12  ;;  %p1948_p13 = scmp.lt.s32.totalorder %s1942_s12, %s1942_s12 }
  0x1e   :  { %p1949_p0 = por %p1948_p13, %p1947_p12 }
  0x20   :  { %p1950_p1 = pnand %p1949_p0, %p1943_p11 }
  0x22   :  { %1953 = shalt.err (!%p1950_p1)
}
  0x23   :  { %s2054_s2 = smov 128   ;;  %s2055_s10 = smov 8  }
  0x24   :  { %65 = dma.hbm_to_vmem [thread:$0]  %s2256_s5, 8192, %s60_s24, [#allocation10], %s2054_s2, %s2054_s2, %s2055_s10  }
  0x25   :  { %s2056_s15 = smov [#allocation3]   ;;  %s2057_s17 = smov [#allocation8]  }
  0x26   :  { %s24_s16 = sshll.u32 %s2056_s15, 4  ;;  %s48_s18 = sshll.u32 %s2057_s17, 4  ;;  %s25_s16 = int_to_ptr.vmem [resolvable:$true] %s24_s16  ;;  %s49_s18 = int_to_ptr.vmem [resolvable:$true] %s48_s18 }
  0x27   :  { %s1954_s21 = scalar_lea.hbm %s2251_s0, 64 }
  0x28   :  { %p1955_p2 = scmp.ne.s32.totalorder %s2251_s0, %s1954_s21  ;;  %p1958_p3 = scmp.lt.u32.totalorder %s1954_s21, %s2251_s0 }
  0x2a   :  { %p1960_p4 = pnand %p1958_p3, %p1955_p2 }
  0x2c   :  { %1963 = shalt.err (!%p1960_p4)
}
  0x2d   :  { %s1964_s5 = scalar_lea.vmem %s25_s16, 64  ;;  %p1969_p6 = scmp.lt.s32.totalorder %s25_s16, %s25_s16 }
  0x2e   :  { %p1965_p5 = scmp.ne.s32.totalorder %s25_s16, %s1964_s5  ;;  %p1970_p7 = scmp.lt.s32.totalorder %s1964_s5, %s1964_s5 }
  0x30   :  { %p1971_p8 = por %p1970_p7, %p1969_p6 }
  0x32   :  { %p1972_p9 = pnand %p1971_p8, %p1965_p5 }
  0x34   :  { %1975 = shalt.err (!%p1972_p9)
}
  0x35   :  { %27 = dma.hbm_to_vmem [thread:$0]  %s2251_s0, 64, %s25_s16, [#allocation4]  }
  0x36   :  { %s1976_s30 = scalar_lea.hbm %s2254_s3, 256 }
  0x37   :  { %p1977_p10 = scmp.ne.s32.totalorder %s2254_s3, %s1976_s30  ;;  %p1980_p11 = scmp.lt.u32.totalorder %s1976_s30, %s2254_s3 }
  0x39   :  { %p1982_p12 = pnand %p1980_p11, %p1977_p10 }
  0x3b   :  { %1985 = shalt.err (!%p1982_p12)
}
  0x3c   :  { %s1986_s13 = scalar_lea.vmem %s49_s18, 256  ;;  %p1991_p0 = scmp.lt.s32.totalorder %s49_s18, %s49_s18 }
  0x3d   :  { %p1987_p13 = scmp.ne.s32.totalorder %s49_s18, %s1986_s13  ;;  %p1992_p1 = scmp.lt.s32.totalorder %s1986_s13, %s1986_s13 }
  0x3f   :  { %p1993_p2 = por %p1992_p1, %p1991_p0 }
  0x41   :  { %p1994_p3 = pnand %p1993_p2, %p1987_p13 }
  0x43   :  { %1997 = shalt.err (!%p1994_p3)
}
  0x44   :  { %51 = dma.hbm_to_vmem [thread:$0]  %s2254_s3, 256, %s49_s18, [#allocation7]  }
  0x45   :  { %s2058_s15 = smov [#allocation11]   ;;  %s1998_s20 = scalar_lea.hbm %s2258_s7, 2048 }
  0x46   :  { %s73_s16 = sshll.u32 %s2058_s15, 4  ;;  %p1999_p4 = scmp.ne.s32.totalorder %s2258_s7, %s1998_s20  ;;  %s74_s16 = int_to_ptr.vmem [resolvable:$true] %s73_s16 }
  0x47   :  { %p2002_p5 = scmp.lt.u32.totalorder %s1998_s20, %s2258_s7 }
  0x49   :  { %p2004_p6 = pnand %p2002_p5, %p1999_p4 }
  0x4b   :  { %2007 = shalt.err (!%p2004_p6)
}
  0x4c   :  { %s2008_s26 = scalar_lea.vmem %s74_s16, 2048  ;;  %p2013_p8 = scmp.lt.s32.totalorder %s74_s16, %s74_s16 }
  0x4d   :  { %p2009_p7 = scmp.ne.s32.totalorder %s74_s16, %s2008_s26  ;;  %p2014_p9 = scmp.lt.s32.totalorder %s2008_s26, %s2008_s26 }
  0x4f   :  { %p2015_p10 = por %p2014_p9, %p2013_p8 }
  0x51   :  { %p2016_p11 = pnand %p2015_p10, %p2009_p7 }
  0x53   :  { %2019 = shalt.err (!%p2016_p11)
}
  0x54   :  { %s2059_s3 = smov 64   ;;  %s2060_s18 = smov 4  }
  0x55   :  { %79 = dma.hbm_to_vmem [thread:$0]  %s2258_s7, 2048, %s74_s16, [#allocation10], %s2059_s3, %s2059_s3, %s2060_s18  }
  0x56   :  { %2042 = dma.done.wait [#allocation4], 64  }
  0x57   :  { %2043 = vsyncadd [#allocation4], 4294967232 }
  0x58   :  { %2044 = dma.done.wait [#allocation7], 8448  }
  0x59   :  { %2045 = vsyncadd [#allocation7], 4294958848 }
  0x5a   :  { %2046 = dma.done.wait [#allocation10], 10240  }
  0x5b   :  { %2047 = vsyncadd [#allocation10], 4294957056  ;;  %v2061_v0 = vmov 0   ;;  %v1694_v1 = vld [vmem:[#allocation6 + $0x4] ss:$16 sps:$4 sm:$0xff]   ;;  %vm120_vm0 = vcmask 1043456  }
  0x5c   :  { %165 = vmatprep.mubr.bf16.mxu0 %v2061_v0  ;;  %v1696_v2 = vld [vmem:[#allocation6] ss:$16 sps:$4 sm:$0xff]   ;;  %637 = vmatprep.subr.bf16.mxu1 %v1694_v1  ;;  %v1697_v3 = vld [vmem:[#allocation6 + $0x24] ss:$16 sps:$4 sm:$0xff]   ;;  %v102_v28 = vld [vmem:[%s2252_s1] sm:$0x3] }
  0x5d   :  { %638 = vmatpush1.bf16.msra.mxu1 %v1696_v2  ;;  %v1699_v4 = vld [vmem:[#allocation6 + $0x20] ss:$16 sps:$4 sm:$0xff]   ;;  %v1700_v5 = vld [vmem:[#allocation6 + $0x44] ss:$16 sps:$4 sm:$0xff]   ;;  %v103_v32 = vpack.c.bf16 %v102_v28, %v102_v28  ;;  %vm116_vm1 = vcmask 64512   ;;  %v105_v33 = vld [vmem:[#allocation8 + $0x8] sm:$0xff] }
  0x5e   :  { %639 = vmatprep.subr.bf16.mxu1 %v1697_v3  ;;  %v1702_v6 = vld [vmem:[#allocation6 + $0x40] ss:$16 sps:$4 sm:$0xff]   ;;  %v1703_v7 = vld [vmem:[#allocation6 + $0x64] ss:$16 sps:$4 sm:$0xff]   ;;  %v1501_v34 = vcombine.high %v105_v33, %v105_v33  ;;  %v1500_v35 = vcombine.low %v105_v33, %v105_v33  ;;  %v1744_v46 = vld [vmem:[#allocation6 + $0xc] ss:$16 sps:$4 sm:$0xff]  }
  0x5f   :  { %v1705_v8 = vld [vmem:[#allocation6 + $0x60] ss:$16 sps:$4 sm:$0xff]   ;;  %v1706_v9 = vld [vmem:[#allocation6 + $0x84] ss:$16 sps:$4 sm:$0xff]   ;;  %v1742_v47 = vld [vmem:[#allocation6 + $0x8] ss:$16 sps:$4 sm:$0xff]  }
  0x60   :  { %v1708_v10 = vld [vmem:[#allocation6 + $0x80] ss:$16 sps:$4 sm:$0xff]   ;;  %v1709_v11 = vld [vmem:[#allocation6 + $0xa4] ss:$16 sps:$4 sm:$0xff]   ;;  %v128_v37 = vsel %vm120_vm0, %v1500_v35, 0  ;;  %s2063_s11 = smov [#allocation12]  }
  0x61   :  { %640 = vmatpush1.bf16.msra.mxu1 %v1699_v4  ;;  %v1711_v12 = vld [vmem:[#allocation6 + $0xa0] ss:$16 sps:$4 sm:$0xff]   ;;  %v1712_v13 = vld [vmem:[#allocation6 + $0xc4] ss:$16 sps:$4 sm:$0xff]   ;;  %v1747_v49 = vld [vmem:[#allocation6 + $0x2c] ss:$16 sps:$4 sm:$0xff]  }
  0x62   :  { %641 = vmatprep.subr.bf16.mxu1 %v1700_v5  ;;  %v2175_v14 = vld.sshfl [vmem:[#allocation3] sm:$0x33 pattern:$0x76325410]  ;;  %v1714_v16 = vld [vmem:[#allocation6 + $0xc0] ss:$16 sps:$4 sm:$0xff]  }
  0x63   :  { %v248_v15 = vcombine.high %v2175_v14, %v2175_v14  ;;  %v1715_v17 = vld [vmem:[#allocation6 + $0xe4] ss:$16 sps:$4 sm:$0xff]   ;;  %v1717_v19 = vld [vmem:[#allocation6 + $0xe0] ss:$16 sps:$4 sm:$0xff]   ;;  %v2194_v48 = vpack.c.bf16 %v2175_v14, %v2175_v14  ;;  %v1745_v50 = vld [vmem:[#allocation6 + $0x28] ss:$16 sps:$4 sm:$0xff]  }
  0x64   :  { %v1718_v20 = vld [vmem:[#allocation6 + $0x104] ss:$16 sps:$4 sm:$0xff]   ;;  %v1720_v21 = vld [vmem:[#allocation6 + $0x100] ss:$16 sps:$4 sm:$0xff]   ;;  %v1750_v51 = vld [vmem:[#allocation6 + $0x4c] ss:$16 sps:$4 sm:$0xff]  }
  0x65   :  { %642 = vmatpush1.bf16.msra.mxu1 %v1702_v6  ;;  %v2179_v18 = vpack.c.bf16 %v248_v15, %v248_v15  ;;  %v1721_v22 = vld [vmem:[#allocation6 + $0x124] ss:$16 sps:$4 sm:$0xff]   ;;  %v1723_v23 = vld [vmem:[#allocation6 + $0x120] ss:$16 sps:$4 sm:$0xff]   ;;  %v1748_v52 = vld [vmem:[#allocation6 + $0x48] ss:$16 sps:$4 sm:$0xff]  }
  0x66   :  { %643 = vmatprep.subr.bf16.mxu1 %v1703_v7  ;;  %v1724_v24 = vld [vmem:[#allocation6 + $0x144] ss:$16 sps:$4 sm:$0xff]   ;;  %v1726_v29 = vld [vmem:[#allocation6 + $0x140] ss:$16 sps:$4 sm:$0xff]   ;;  %v1753_v53 = vld [vmem:[#allocation6 + $0x6c] ss:$16 sps:$4 sm:$0xff]  }
  0x67   :  { %669 = vmatprep.mubr.bf16.mxu1 %v2179_v18  ;;  %v104_v25 = vld [vmem:[#allocation8] sm:$0xff]  ;;  %v1751_v54 = vld [vmem:[#allocation6 + $0x68] ss:$16 sps:$4 sm:$0xff]   ;;  %v1756_v55 = vld [vmem:[#allocation6 + $0x8c] ss:$16 sps:$4 sm:$0xff]   ;;  %s1487_s12 = sshll.u32 %s2063_s11, 4  ;;  %s1488_s12 = int_to_ptr.vmem [resolvable:$true] %s1487_s12 }
  0x68   :  { %v1499_v26 = vcombine.high %v104_v25, %v104_v25  ;;  %v1498_v27 = vcombine.low %v104_v25, %v104_v25  ;;  %v1727_v30 = vld [vmem:[#allocation6 + $0x164] ss:$16 sps:$4 sm:$0xff]   ;;  %v1729_v36 = vld [vmem:[#allocation6 + $0x160] ss:$16 sps:$4 sm:$0xff]   ;;  %v1754_v56 = vld [vmem:[#allocation6 + $0x88] ss:$16 sps:$4 sm:$0xff]   ;;  %p2025_p13 = scmp.lt.s32.totalorder %s1488_s12, %s1488_s12 }
  0x69   :  { %644 = vmatpush1.bf16.msra.mxu1 %v1705_v8  ;;  %v1730_v38 = vld [vmem:[#allocation6 + $0x184] ss:$16 sps:$4 sm:$0xff]   ;;  %v1732_v39 = vld [vmem:[#allocation6 + $0x180] ss:$16 sps:$4 sm:$0xff]   ;;  %v1759_v57 = vld [vmem:[#allocation6 + $0xac] ss:$16 sps:$4 sm:$0xff]  }
  0x6a   :  { %645 = vmatprep.subr.bf16.mxu1 %v1706_v9  ;;  %1502 = vmatprep.subr.msk.bf16.mxu0 %vm120_vm0, %v1499_v26  ;;  %v122_v31 = vsel %vm120_vm0, %v1498_v27, 0  ;;  %v1733_v40 = vld [vmem:[#allocation6 + $0x1a4] ss:$16 sps:$4 sm:$0xff]   ;;  %v1735_v41 = vld [vmem:[#allocation6 + $0x1a0] ss:$16 sps:$4 sm:$0xff]   ;;  %s2020_s2 = scalar_lea.vmem %s1488_s12, 32 }
  0x6b   :  { %134 = vmatpush1.bf16.msra.mxu0 %v122_v31  ;;  %v1736_v42 = vld [vmem:[#allocation6 + $0x1c4] ss:$16 sps:$4 sm:$0xff]   ;;  %v1738_v43 = vld [vmem:[#allocation6 + $0x1c0] ss:$16 sps:$4 sm:$0xff]   ;;  %v1757_v58 = vld [vmem:[#allocation6 + $0xa8] ss:$16 sps:$4 sm:$0xff]   ;;  %p2021_p12 = scmp.ne.s32.totalorder %s1488_s12, %s2020_s2  ;;  %p2026_p0 = scmp.lt.s32.totalorder %s2020_s2, %s2020_s2 }
  0x6c   :  { %1504 = vmatprep.subr.msk.bf16.mxu0 %vm120_vm0, %v1501_v34  ;;  %v1739_v44 = vld [vmem:[#allocation6 + $0x1e4] ss:$16 sps:$4 sm:$0xff]   ;;  %v1741_v45 = vld [vmem:[#allocation6 + $0x1e0] ss:$16 sps:$4 sm:$0xff]   ;;  %v1762_v59 = vld [vmem:[#allocation6 + $0xcc] ss:$16 sps:$4 sm:$0xff]  }
  0x6d   :  { %646 = vmatpush1.bf16.msra.mxu1 %v1708_v10  ;;  %v1760_v60 = vld [vmem:[#allocation6 + $0xc8] ss:$16 sps:$4 sm:$0xff]   ;;  %v1765_v61 = vld [vmem:[#allocation6 + $0xec] ss:$16 sps:$4 sm:$0xff]   ;;  %p2027_p1 = por %p2026_p0, %p2025_p13 }
  0x6e   :  { %647 = vmatprep.subr.bf16.mxu1 %v1709_v11  ;;  %1503 = vmatmul.mubr.msk.bf16.vlgmr.msra.gmra.mrb[0].mxu0 %vm116_vm1, %v103_v32  ;;  %v1763_v62 = vld [vmem:[#allocation6 + $0xe8] ss:$16 sps:$4 sm:$0xff]   ;;  %v1768_v63 = vld [vmem:[#allocation6 + $0x10c] ss:$16 sps:$4 sm:$0xff]  }
  0x6f   :  { %175 = vmatpush1.bf16.msra.mxu0 %v128_v37  ;;  %206 = vmatprep.mubr.bf16.mxu0 %v2061_v0  ;;  %v1766_v0 = vld [vmem:[#allocation6 + $0x108] ss:$16 sps:$4 sm:$0xff]   ;;  %v1771_v1 = vld [vmem:[#allocation6 + $0x12c] ss:$16 sps:$4 sm:$0xff]   ;;  %p2028_p2 = pnand %p2027_p1, %p2021_p12 }
  0x70   :  { %v1769_v2 = vld [vmem:[#allocation6 + $0x128] ss:$16 sps:$4 sm:$0xff]   ;;  %v1774_v3 = vld [vmem:[#allocation6 + $0x14c] ss:$16 sps:$4 sm:$0xff]  }
  0x71   :  { %648 = vmatpush1.bf16.msra.mxu1 %v1711_v12  ;;  %v1772_v4 = vld [vmem:[#allocation6 + $0x148] ss:$16 sps:$4 sm:$0xff]   ;;  %v1779_v5 = vld [vmem:[#allocation6 + $0x16c] ss:$16 sps:$4 sm:$0xff]  }
  0x72   :  { %649 = vmatprep.subr.bf16.mxu1 %v1712_v13  ;;  %v1777_v6 = vld [vmem:[#allocation6 + $0x168] ss:$16 sps:$4 sm:$0xff]   ;;  %v1782_v7 = vld [vmem:[#allocation6 + $0x18c] ss:$16 sps:$4 sm:$0xff]  }
  0x73   :  { %v1780_v8 = vld [vmem:[#allocation6 + $0x188] ss:$16 sps:$4 sm:$0xff]   ;;  %v1787_v9 = vld [vmem:[#allocation6 + $0x1ac] ss:$16 sps:$4 sm:$0xff]  }
  0x74   :  { %v1785_v10 = vld [vmem:[#allocation6 + $0x1a8] ss:$16 sps:$4 sm:$0xff]   ;;  %v1790_v11 = vld [vmem:[#allocation6 + $0x1cc] ss:$16 sps:$4 sm:$0xff]  }
  0x75   :  { %650 = vmatpush1.bf16.msra.mxu1 %v1714_v16  ;;  %v1788_v12 = vld [vmem:[#allocation6 + $0x1c8] ss:$16 sps:$4 sm:$0xff]   ;;  %v1793_v13 = vld [vmem:[#allocation6 + $0x1ec] ss:$16 sps:$4 sm:$0xff]  }
  0x76   :  { %651 = vmatprep.subr.bf16.mxu1 %v1715_v17  ;;  %1505 = vmatmul.mubr.msk.bf16.vlgmr.msra.gmra.mrb[4].mxu0 %vm116_vm1, %v103_v32  ;;  %v1791_v14 = vld [vmem:[#allocation6 + $0x1e8] ss:$16 sps:$4 sm:$0xff]   ;;  %v1796_v16 = vld [vmem:[#allocation9 + $0x4] ss:$8 sps:$4 sm:$0xff]   ;;  %v1799_v17 = vld [vmem:[#allocation9 + $0x14] ss:$8 sps:$4 sm:$0xff]  }
  0x77   :  { %v1794_v15 = vld [vmem:[#allocation9] ss:$8 sps:$4 sm:$0xff]   ;;  %1209 = vmatprep.subr.bf16.mxu0 %v1796_v16  ;;  %v1811_v25 = vld [vmem:[#allocation9 + $0x54] ss:$8 sps:$4 sm:$0xff]   ;;  %v1809_v26 = vld [vmem:[#allocation9 + $0x50] ss:$8 sps:$4 sm:$0xff]  }
  0x78   :  { %1210 = vmatpush1.bf16.msra.mxu0 %v1794_v15  ;;  %v1814_v27 = vld [vmem:[#allocation9 + $0x64] ss:$8 sps:$4 sm:$0xff]   ;;  %v1812_v28 = vld [vmem:[#allocation9 + $0x60] ss:$8 sps:$4 sm:$0xff]   ;;  %v1823_v33 = vld [vmem:[#allocation9 + $0x94] ss:$8 sps:$4 sm:$0xff]  }
  0x79   :  { %652 = vmatpush1.bf16.msra.mxu1 %v1717_v19  ;;  %1211 = vmatprep.subr.bf16.mxu0 %v1799_v17  ;;  %v1802_v19 = vld [vmem:[#allocation9 + $0x24] ss:$8 sps:$4 sm:$0xff]   ;;  %v1818_v32 = vld [vmem:[#allocation9 + $0x80] ss:$8 sps:$4 sm:$0xff]   ;;  %v1821_v34 = vld [vmem:[#allocation9 + $0x90] ss:$8 sps:$4 sm:$0xff]  }
  0x7a   :  { %653 = vmatprep.subr.bf16.mxu1 %v1718_v20  ;;  %v1800_v20 = vld [vmem:[#allocation9 + $0x20] ss:$8 sps:$4 sm:$0xff]   ;;  %v1820_v31 = vld [vmem:[#allocation9 + $0x84] ss:$8 sps:$4 sm:$0xff]   ;;  %v1829_v37 = vld [vmem:[#allocation9 + $0xb4] ss:$8 sps:$4 sm:$0xff]  }
  0x7b   :  { %v1826_v35 = vld [vmem:[#allocation9 + $0xa4] ss:$8 sps:$4 sm:$0xff]   ;;  %v1897_v15 = vld [vmem:[#allocation11 + $0x18] sm:$0xff]  }
  0x7c   :  { %v1898_v16 = vld [vmem:[#allocation11 + $0x60] sm:$0xff]  }
  0x7d   :  { %654 = vmatpush1.bf16.msra.mxu1 %v1720_v21  ;;  %v1805_v21 = vld [vmem:[#allocation9 + $0x34] ss:$8 sps:$4 sm:$0xff]   ;;  %v1899_v17 = vld [vmem:[#allocation11 + $0x20] sm:$0xff]  }
  0x7e   :  { %655 = vmatprep.subr.bf16.mxu1 %v1721_v22  ;;  %v1803_v22 = vld [vmem:[#allocation9 + $0x30] ss:$8 sps:$4 sm:$0xff]  }
  0x81   :  { %656 = vmatpush1.bf16.msra.mxu1 %v1723_v23  ;;  %v1808_v23 = vld [vmem:[#allocation9 + $0x44] ss:$8 sps:$4 sm:$0xff]  }
  0x82   :  { %657 = vmatprep.subr.bf16.mxu1 %v1724_v24  ;;  %v1806_v24 = vld [vmem:[#allocation9 + $0x40] ss:$8 sps:$4 sm:$0xff]  }
  0x85   :  { %658 = vmatpush1.bf16.msra.mxu1 %v1726_v29  ;;  %v1817_v29 = vld [vmem:[#allocation9 + $0x74] ss:$8 sps:$4 sm:$0xff]  }
  0x86   :  { %659 = vmatprep.subr.bf16.mxu1 %v1727_v30  ;;  %v1815_v30 = vld [vmem:[#allocation9 + $0x70] ss:$8 sps:$4 sm:$0xff]  }
  0x89   :  { %660 = vmatpush1.bf16.msra.mxu1 %v1729_v36  ;;  %v1824_v36 = vld [vmem:[#allocation9 + $0xa0] ss:$8 sps:$4 sm:$0xff]  }
  0x8a   :  { %661 = vmatprep.subr.bf16.mxu1 %v1730_v38  ;;  %v1827_v38 = vld [vmem:[#allocation9 + $0xb0] ss:$8 sps:$4 sm:$0xff]  }
  0x8d   :  { %662 = vmatpush1.bf16.msra.mxu1 %v1732_v39  ;;  %v1832_v39 = vld [vmem:[#allocation9 + $0xc4] ss:$8 sps:$4 sm:$0xff]  }
  0x8e   :  { %663 = vmatprep.subr.bf16.mxu1 %v1733_v40  ;;  %v1830_v40 = vld [vmem:[#allocation9 + $0xc0] ss:$8 sps:$4 sm:$0xff]  }
  0x91   :  { %664 = vmatpush1.bf16.msra.mxu1 %v1735_v41  ;;  %v1835_v41 = vld [vmem:[#allocation9 + $0xd4] ss:$8 sps:$4 sm:$0xff]  }
  0x92   :  { %665 = vmatprep.subr.bf16.mxu1 %v1736_v42  ;;  %v1833_v42 = vld [vmem:[#allocation9 + $0xd0] ss:$8 sps:$4 sm:$0xff]  }
  0x95   :  { %666 = vmatpush1.bf16.msra.mxu1 %v1738_v43  ;;  %v1836_v43 = vld [vmem:[#allocation9 + $0xe0] ss:$8 sps:$4 sm:$0xff]  }
  0x96   :  { %667 = vmatprep.subr.bf16.mxu1 %v1739_v44  ;;  %v1838_v44 = vld [vmem:[#allocation9 + $0xe4] ss:$8 sps:$4 sm:$0xff]  }
  0x99   :  { %668 = vmatpush1.bf16.msra.mxu1 %v1741_v45  ;;  %v1841_v45 = vld [vmem:[#allocation9 + $0xf4] ss:$8 sps:$4 sm:$0xff]  }
  0x9a   :  { %678 = vmatprep.subr.bf16.mxu1 %v1744_v46  ;;  %v1839_v46 = vld [vmem:[#allocation9 + $0xf0] ss:$8 sps:$4 sm:$0xff]  }
  0x9c   :  { %670 = vmatmul.mubr.bf16.vlgmr.msra.gmra.mrb[0].mxu1 %v2194_v48 }
  0x9d   :  { %679 = vmatpush1.bf16.msra.mxu1 %v1742_v47  ;;  %710 = vmatprep.mubr.bf16.mxu1 %v2179_v18  ;;  %v1797_v18 = vld [vmem:[#allocation9 + $0x10] ss:$8 sps:$4 sm:$0xff]   ;;  %v1844_v47 = vld [vmem:[#allocation9 + $0x104] ss:$8 sps:$4 sm:$0xff]  }
  0x9e   :  { %680 = vmatprep.subr.bf16.mxu1 %v1747_v49  ;;  %1212 = vmatpush1.bf16.msra.mxu0 %v1797_v18  ;;  %v1900_v18 = vld [vmem:[#allocation11 + $0x68] sm:$0xff]  }
  0x9f   :  { %1213 = vmatprep.subr.bf16.mxu0 %v1802_v19  ;;  %v1901_v19 = vld [vmem:[#allocation11 + $0x28] sm:$0xff]  }
  0xa1   :  { %681 = vmatpush1.bf16.msra.mxu1 %v1745_v50  ;;  %v224_v50 = vlaneseq }
  0xa2   :  { %682 = vmatprep.subr.bf16.mxu1 %v1750_v51  ;;  %1214 = vmatpush1.bf16.msra.mxu0 %v1800_v20 }
  0xa3   :  { %1215 = vmatprep.subr.bf16.mxu0 %v1805_v21 }
  0xa5   :  { %683 = vmatpush1.bf16.msra.mxu1 %v1748_v52 }
  0xa6   :  { %684 = vmatprep.subr.bf16.mxu1 %v1753_v53  ;;  %1216 = vmatpush1.bf16.msra.mxu0 %v1803_v22 }
  0xa7   :  { %1217 = vmatprep.subr.bf16.mxu0 %v1808_v23 }
  0xa9   :  { %685 = vmatpush1.bf16.msra.mxu1 %v1751_v54 }
  0xaa   :  { %686 = vmatprep.subr.bf16.mxu1 %v1756_v55  ;;  %1218 = vmatpush1.bf16.msra.mxu0 %v1806_v24  ;;  %v747_v24 = vld [vmem:[%s2255_s4] sm:$0xf] }
  0xab   :  { %1219 = vmatprep.subr.bf16.mxu0 %v1811_v25 }
  0xad   :  { %687 = vmatpush1.bf16.msra.mxu1 %v1754_v56 }
  0xae   :  { %688 = vmatprep.subr.bf16.mxu1 %v1759_v57  ;;  %1220 = vmatpush1.bf16.msra.mxu0 %v1809_v26  ;;  %v2199_v57 = vshrl.u32 %v224_v50, 7 }
  0xaf   :  { %1221 = vmatprep.subr.bf16.mxu0 %v1814_v27 }
  0xb0   :  { %v751_v20 = vsub.s32 0, %v2199_v57  ;;  %v755_v21 = vsub.s32 1, %v2199_v57  ;;  %v759_v22 = vsub.s32 2, %v2199_v57  ;;  %v763_v23 = vsub.s32 3, %v2199_v57 }
  0xb1   :  { %689 = vmatpush1.bf16.msra.mxu1 %v1757_v58 }
  0xb2   :  { %690 = vmatprep.subr.bf16.mxu1 %v1762_v59  ;;  %1222 = vmatpush1.bf16.msra.mxu0 %v1812_v28  ;;  %v752_v25 = vrot.slane %v747_v24, %v751_v20  ;;  %v756_v26 = vrot.slane %v747_v24, %v755_v21  ;;  %v760_v27 = vrot.slane %v747_v24, %v759_v22  ;;  %v1889_v22 = vld [vmem:[#allocation9 + $0x1f4] ss:$8 sps:$4 sm:$0xff]  }
  0xb3   :  { %1223 = vmatprep.subr.bf16.mxu0 %v1817_v29  ;;  %v764_v28 = vrot.slane %v747_v24, %v763_v23  ;;  %v1887_v23 = vld [vmem:[#allocation9 + $0x1f0] ss:$8 sps:$4 sm:$0xff]  }
  0xb4   :  { %v765_v29 = vcombine.low %v752_v25, %v756_v26  ;;  %v1902_v25 = vld [vmem:[#allocation11 + $0x70] sm:$0xff]  }
  0xb5   :  { %691 = vmatpush1.bf16.msra.mxu1 %v1760_v60  ;;  %v1903_v26 = vld [vmem:[#allocation11 + $0x30] sm:$0xff]  }
  0xb6   :  { %692 = vmatprep.subr.bf16.mxu1 %v1765_v61  ;;  %1224 = vmatpush1.bf16.msra.mxu0 %v1815_v30  ;;  %v766_v30 = vcombine.low %v760_v27, %v764_v28  ;;  %v1904_v27 = vld [vmem:[#allocation11 + $0x78] sm:$0xff]  }
  0xb7   :  { %1225 = vmatprep.subr.bf16.mxu0 %v1820_v31  ;;  %v1905_v28 = vld [vmem:[#allocation11 + $0x38] sm:$0xff]  }
  0xb9   :  { %693 = vmatpush1.bf16.msra.mxu1 %v1763_v62 }
  0xba   :  { %694 = vmatprep.subr.bf16.mxu1 %v1768_v63  ;;  %1226 = vmatpush1.bf16.msra.mxu0 %v1818_v32 }
  0xbb   :  { %1227 = vmatprep.subr.bf16.mxu0 %v1823_v33 }
  0xbd   :  { %695 = vmatpush1.bf16.msra.mxu1 %v1766_v0 }
  0xbe   :  { %696 = vmatprep.subr.bf16.mxu1 %v1771_v1  ;;  %1228 = vmatpush1.bf16.msra.mxu0 %v1821_v34 }
  0xbf   :  { %1229 = vmatprep.subr.bf16.mxu0 %v1826_v35 }
  0xc1   :  { %697 = vmatpush1.bf16.msra.mxu1 %v1769_v2 }
  0xc2   :  { %698 = vmatprep.subr.bf16.mxu1 %v1774_v3  ;;  %1230 = vmatpush1.bf16.msra.mxu0 %v1824_v36 }
  0xc3   :  { %1231 = vmatprep.subr.bf16.mxu0 %v1829_v37 }
  0xc5   :  { %699 = vmatpush1.bf16.msra.mxu1 %v1772_v4 }
  0xc6   :  { %700 = vmatprep.subr.bf16.mxu1 %v1779_v5  ;;  %1232 = vmatpush1.bf16.msra.mxu0 %v1827_v38 }
  0xc7   :  { %1233 = vmatprep.subr.bf16.mxu0 %v1832_v39 }
  0xc9   :  { %701 = vmatpush1.bf16.msra.mxu1 %v1777_v6 }
  0xca   :  { %702 = vmatprep.subr.bf16.mxu1 %v1782_v7  ;;  %1234 = vmatpush1.bf16.msra.mxu0 %v1830_v40 }
  0xcb   :  { %1235 = vmatprep.subr.bf16.mxu0 %v1835_v41 }
  0xcd   :  { %703 = vmatpush1.bf16.msra.mxu1 %v1780_v8  ;;  %v1890_v8 = vld [vmem:[#allocation11 + $0x40] sm:$0xff]  }
  0xce   :  { %704 = vmatprep.subr.bf16.mxu1 %v1787_v9  ;;  %1236 = vmatpush1.bf16.msra.mxu0 %v1833_v42  ;;  %v1891_v9 = vld [vmem:[#allocation11] sm:$0xff]  }
  0xcf   :  { %1237 = vmatprep.subr.bf16.mxu0 %v1838_v44 }
  0xd1   :  { %705 = vmatpush1.bf16.msra.mxu1 %v1785_v10  ;;  %v1892_v10 = vld [vmem:[#allocation11 + $0x48] sm:$0xff]  }
  0xd2   :  { %706 = vmatprep.subr.bf16.mxu1 %v1790_v11  ;;  %1238 = vmatpush1.bf16.msra.mxu0 %v1836_v43  ;;  %v1893_v11 = vld [vmem:[#allocation11 + $0x8] sm:$0xff]  }
  0xd3   :  { %1239 = vmatprep.subr.bf16.mxu0 %v1841_v45 }
  0xd5   :  { %707 = vmatpush1.bf16.msra.mxu1 %v1788_v12  ;;  %v1894_v12 = vld [vmem:[#allocation11 + $0x50] sm:$0xff]  }
  0xd6   :  { %708 = vmatprep.subr.bf16.mxu1 %v1793_v13  ;;  %1240 = vmatpush1.bf16.msra.mxu0 %v1839_v46  ;;  %v1895_v13 = vld [vmem:[#allocation11 + $0x10] sm:$0xff]  }
  0xd7   :  { %1250 = vmatprep.subr.bf16.mxu0 %v1844_v47 }
  0xd9   :  { %709 = vmatpush1.bf16.msra.mxu1 %v1791_v14  ;;  %v1896_v14 = vld [vmem:[#allocation11 + $0x58] sm:$0xff]  }
  0xda   :  { %1652 = vmatprep.subr.bf16.mxu1 %v1890_v8  ;;  %v1871_v8 = vld [vmem:[#allocation9 + $0x194] ss:$8 sps:$4 sm:$0xff]  }
  0xdc   :  { %711 = vmatmul.mubr.bf16.vlgmr.msra.gmra.mrb[4].mxu1 %v2194_v48  ;;  %v2062_v48 = vmov 1983009808  }
  0xdd   :  { %v222_v49 = vunpack.c.l.s4 %v2062_v48  ;;  %1653 = vmatpush3.bf16.msra.mxu1 %v1891_v9  ;;  %v1869_v9 = vld [vmem:[#allocation9 + $0x190] ss:$8 sps:$4 sm:$0xff]  }
  0xde   :  { %1654 = vmatprep.subr.bf16.mxu1 %v1892_v10  ;;  %v1874_v10 = vld [vmem:[#allocation9 + $0x1a4] ss:$8 sps:$4 sm:$0xff]  }
  0xdf   :  { %v223_v56 = vunpack.c.0.s8 %v222_v49 }
  0xe1   :  { %v2202_v58 = vsub.s32 %v223_v56, %v2199_v57  ;;  %1655 = vmatpush3.bf16.msra.mxu1 %v1893_v11  ;;  %v1845_v56 = vld [vmem:[#allocation9 + $0x110] ss:$8 sps:$4 sm:$0xff]   ;;  %v1872_v11 = vld [vmem:[#allocation9 + $0x1a0] ss:$8 sps:$4 sm:$0xff]   ;;  %v1635_v57 = vld [vmem:[%s2259_s8] ss:$0 sm:$0xff] }
  0xe2   :  { %1656 = vmatprep.subr.bf16.mxu1 %v1894_v12  ;;  %v1877_v12 = vld [vmem:[#allocation9 + $0x1b4] ss:$8 sps:$4 sm:$0xff]  }
  0xe3   :  { %v773_v34 = vrot.slane %v765_v29, %v2202_v58  ;;  %v780_v35 = vrot.slane %v766_v30, %v2202_v58  ;;  %v877_v29 = vld [vmem:[%s2257_s6] sm:$0x3] }
  0xe4   :  { %v882_v30 = vrot.slane %v877_v29, %v751_v20 }
  0xe5   :  { %1657 = vmatpush3.bf16.msra.mxu1 %v1895_v13  ;;  %v781_v41 = vcombine.low %v773_v34, %v780_v35  ;;  %v1875_v13 = vld [vmem:[#allocation9 + $0x1b0] ss:$8 sps:$4 sm:$0xff]  }
  0xe6   :  { %1658 = vmatprep.subr.bf16.mxu1 %v1896_v14  ;;  %v1880_v14 = vld [vmem:[#allocation9 + $0x1c4] ss:$8 sps:$4 sm:$0xff]  }
  0xe9   :  { %1659 = vmatpush3.bf16.msra.mxu1 %v1897_v15  ;;  %v1878_v15 = vld [vmem:[#allocation9 + $0x1c0] ss:$8 sps:$4 sm:$0xff]  }
  0xea   :  { %1660 = vmatprep.subr.bf16.mxu1 %v1898_v16  ;;  %v1883_v16 = vld [vmem:[#allocation9 + $0x1d4] ss:$8 sps:$4 sm:$0xff]  }
  0xed   :  { %1661 = vmatpush3.bf16.msra.mxu1 %v1899_v17  ;;  %v1881_v17 = vld [vmem:[#allocation9 + $0x1d0] ss:$8 sps:$4 sm:$0xff]  }
  0xee   :  { %1662 = vmatprep.subr.bf16.mxu1 %v1900_v18  ;;  %v1886_v18 = vld [vmem:[#allocation9 + $0x1e4] ss:$8 sps:$4 sm:$0xff]  }
  0xf1   :  { %1663 = vmatpush3.bf16.msra.mxu1 %v1901_v19  ;;  %v1884_v19 = vld [vmem:[#allocation9 + $0x1e0] ss:$8 sps:$4 sm:$0xff]  }
  0xf2   :  { %1664 = vmatprep.subr.bf16.mxu1 %v1902_v25 }
  0xf5   :  { %1665 = vmatpush3.bf16.msra.mxu1 %v1903_v26 }
  0xf6   :  { %1666 = vmatprep.subr.bf16.mxu1 %v1904_v27 }
  0xf9   :  { %1667 = vmatpush3.bf16.msra.mxu1 %v1905_v28 }
 0x141   :  { %v167_v51 = vpop.f32.mrb[0].mxu0 }
 0x142   :  { %v169_v52 = vpop.f32.mrb[1].mxu0 }
 0x143   :  { %v219_v53 = vcombine.low %v167_v51, %v169_v52  ;;  %v171_v54 = vpop.f32.mrb[2].mxu0  ;;  %v1842_v51 = vld [vmem:[#allocation9 + $0x100] ss:$8 sps:$4 sm:$0xff]  }
 0x144   :  { %v172_v55 = vpop.f32.mrb[3].mxu0  ;;  %v1847_v54 = vld [vmem:[#allocation9 + $0x114] ss:$8 sps:$4 sm:$0xff]  }
 0x145   :  { %v227_v61 = vrot.slane %v219_v53, %v2202_v58 }
 0x149   :  { %v208_v59 = vpop.f32.mrb[4].mxu0 }
 0x14a   :  { %v210_v60 = vpop.f32.mrb[5].mxu0 }
 0x14b   :  { %v220_v62 = vcombine.low %v208_v59, %v210_v60  ;;  %v212_v63 = vpop.f32.mrb[6].mxu0  ;;  %v1850_v59 = vld [vmem:[#allocation9 + $0x124] ss:$8 sps:$4 sm:$0xff]   ;;  %v1848_v60 = vld [vmem:[#allocation9 + $0x120] ss:$8 sps:$4 sm:$0xff]  }
 0x14c   :  { %v213_v0 = vpop.f32.mrb[7].mxu0  ;;  %v1854_v63 = vld [vmem:[#allocation9 + $0x140] ss:$8 sps:$4 sm:$0xff]  }
 0x14d   :  { %v234_v1 = vrot.slane %v220_v62, %v2202_v58  ;;  %v1856_v62 = vld [vmem:[#allocation9 + $0x144] ss:$8 sps:$4 sm:$0xff]   ;;  %v1859_v0 = vld [vmem:[#allocation9 + $0x154] ss:$8 sps:$4 sm:$0xff]  }
 0x14f   :  { %v235_v2 = vcombine.low %v227_v61, %v234_v1  ;;  %v1851_v61 = vld [vmem:[#allocation9 + $0x130] ss:$8 sps:$4 sm:$0xff]  }
 0x150   :  { %v1857_v1 = vld [vmem:[#allocation9 + $0x150] ss:$8 sps:$4 sm:$0xff]  }
 0x16f   :  { %v671_v3 = vpop.f32.mrb[0].mxu1 }
 0x170   :  { %v673_v4 = vpop.f32.mrb[1].mxu1 }
 0x171   :  { %v723_v5 = vcombine.low %v671_v3, %v673_v4  ;;  %v675_v6 = vpop.f32.mrb[2].mxu1  ;;  %v1860_v3 = vld [vmem:[#allocation9 + $0x160] ss:$8 sps:$4 sm:$0xff]   ;;  %v1865_v4 = vld [vmem:[#allocation9 + $0x174] ss:$8 sps:$4 sm:$0xff]  }
 0x172   :  { %v676_v7 = vpop.f32.mrb[3].mxu1  ;;  %v1868_v6 = vld [vmem:[#allocation9 + $0x184] ss:$8 sps:$4 sm:$0xff]  }
 0x173   :  { %v731_v38 = vrot.slane %v723_v5, %v2202_v58  ;;  %v1863_v5 = vld [vmem:[#allocation9 + $0x170] ss:$8 sps:$4 sm:$0xff]   ;;  %v1866_v7 = vld [vmem:[#allocation9 + $0x180] ss:$8 sps:$4 sm:$0xff]  }
 0x1af   :  { %v712_v31 = vpop.f32.mrb[4].mxu1 }
 0x1b0   :  { %v714_v32 = vpop.f32.mrb[5].mxu1 }
 0x1b1   :  { %v724_v33 = vcombine.low %v712_v31, %v714_v32  ;;  %v716_v36 = vpop.f32.mrb[6].mxu1  ;;  %v886_v31 = vrot.slane %v877_v29, %v755_v21 }
 0x1b2   :  { %v717_v37 = vpop.f32.mrb[7].mxu1 }
 0x1b3   :  { %v738_v39 = vrot.slane %v724_v33, %v2202_v58 }
 0x1b5   :  { %v739_v40 = vcombine.low %v731_v38, %v738_v39 }
 0x1b7   :  { %v741_v42 = vadd.f32 %v739_v40, %v235_v2  ;;  %v1862_v2 = vld [vmem:[#allocation9 + $0x164] ss:$8 sps:$4 sm:$0xff]  }
 0x1b9   :  { %v783_v43 = vadd.f32 %v781_v41, %v741_v42 }
 0x1bb   :  { %vm784_vm2 = vcmp.gt.f32.partialorder %v783_v43, 0.0  ;;  %v785_v44 = vmul.f32 0.2, %v783_v43 }
 0x1bd   :  { %v786_v45 = vsel %vm784_vm2, %v783_v43, %v785_v44 }
 0x1be   :  { %v795_v46 = vrot.slane %v786_v45, %v2202_v58  ;;  %v788_v47 = vcombine.high %v786_v45, %v786_v45 }
 0x1c0   :  { %v803_v48 = vcombine.high %v795_v46, %v795_v46  ;;  %v2223_v49 = vrot.slane %v788_v47, %v2202_v58  ;;  %v809_v53 = vpack.c.bf16 %v795_v46, %v795_v46  ;;  %v1853_v58 = vld [vmem:[#allocation9 + $0x134] ss:$8 sps:$4 sm:$0xff]  }
 0x1c2   :  { %v810_v50 = vpack.c.bf16 %v803_v48, %v803_v48  ;;  %v804_v52 = vcombine.high %v2223_v49, %v2223_v49  ;;  %v811_v24 = vpack.c.bf16 %v2223_v49, %v2223_v49 }
 0x1c4   :  { %1241 = vmatprep.mubr.bf16.mxu0 %v810_v50  ;;  %v812_v55 = vpack.c.bf16 %v804_v52, %v804_v52 }
 0x1c5   :  { %1242 = vmatmul.mubr.bf16.vlgmr.msra.gmra.mrb[8].mxu0 %v809_v53 }
 0x1c6   :  { %1251 = vmatpush1.bf16.msra.mxu0 %v1842_v51  ;;  %1282 = vmatprep.mubr.bf16.mxu0 %v812_v55 }
 0x1c7   :  { %1252 = vmatprep.subr.bf16.mxu0 %v1847_v54 }
 0x1ca   :  { %1253 = vmatpush1.bf16.msra.mxu0 %v1845_v56 }
 0x1cb   :  { %1254 = vmatprep.subr.bf16.mxu0 %v1850_v59 }
 0x1ce   :  { %1255 = vmatpush1.bf16.msra.mxu0 %v1848_v60 }
 0x1cf   :  { %1256 = vmatprep.subr.bf16.mxu0 %v1853_v58 }
 0x1d2   :  { %1257 = vmatpush1.bf16.msra.mxu0 %v1851_v61 }
 0x1d3   :  { %1258 = vmatprep.subr.bf16.mxu0 %v1856_v62 }
 0x1d6   :  { %1259 = vmatpush1.bf16.msra.mxu0 %v1854_v63 }
 0x1d7   :  { %1260 = vmatprep.subr.bf16.mxu0 %v1859_v0 }
 0x1da   :  { %1261 = vmatpush1.bf16.msra.mxu0 %v1857_v1 }
 0x1db   :  { %1262 = vmatprep.subr.bf16.mxu0 %v1862_v2 }
 0x1de   :  { %1263 = vmatpush1.bf16.msra.mxu0 %v1860_v3 }
 0x1df   :  { %1264 = vmatprep.subr.bf16.mxu0 %v1865_v4 }
 0x1e2   :  { %1265 = vmatpush1.bf16.msra.mxu0 %v1863_v5 }
 0x1e3   :  { %1266 = vmatprep.subr.bf16.mxu0 %v1868_v6 }
 0x1e6   :  { %1267 = vmatpush1.bf16.msra.mxu0 %v1866_v7 }
 0x1e7   :  { %1268 = vmatprep.subr.bf16.mxu0 %v1871_v8 }
 0x1ea   :  { %1269 = vmatpush1.bf16.msra.mxu0 %v1869_v9 }
 0x1eb   :  { %1270 = vmatprep.subr.bf16.mxu0 %v1874_v10 }
 0x1ee   :  { %1271 = vmatpush1.bf16.msra.mxu0 %v1872_v11 }
 0x1ef   :  { %1272 = vmatprep.subr.bf16.mxu0 %v1877_v12 }
 0x1f2   :  { %1273 = vmatpush1.bf16.msra.mxu0 %v1875_v13 }
 0x1f3   :  { %1274 = vmatprep.subr.bf16.mxu0 %v1880_v14 }
 0x1f6   :  { %1275 = vmatpush1.bf16.msra.mxu0 %v1878_v15 }
 0x1f7   :  { %1276 = vmatprep.subr.bf16.mxu0 %v1883_v16 }
 0x1fa   :  { %1277 = vmatpush1.bf16.msra.mxu0 %v1881_v17 }
 0x1fb   :  { %1278 = vmatprep.subr.bf16.mxu0 %v1886_v18 }
 0x1fe   :  { %1279 = vmatpush1.bf16.msra.mxu0 %v1884_v19 }
 0x1ff   :  { %1280 = vmatprep.subr.bf16.mxu0 %v1889_v22 }
 0x202   :  { %1281 = vmatpush1.bf16.msra.mxu0 %v1887_v23 }
 0x205   :  { %1283 = vmatmul.mubr.bf16.vlgmr.msra.gmra.mrb[8].mxu0 %v811_v24 }
 0x2d8   :  { %v1284_v32 = vpop.f32.mrb[8].mxu0 }
 0x2d9   :  { %v1674_v33 = vadd.f32 %v1284_v32, %v882_v30  ;;  %v1286_v34 = vpop.f32.mrb[9].mxu0 }
 0x2da   :  { %v1675_v35 = vadd.f32 %v1286_v34, %v886_v31  ;;  %v1288_v36 = vpop.f32.mrb[10].mxu0 }
 0x2db   :  { %vm1291_vm3 = vcmp.gt.f32.partialorder %v1674_v33, 0.0  ;;  %v1293_v37 = vmul.f32 0.2, %v1674_v33  ;;  %v1289_v38 = vpop.f32.mrb[11].mxu0 }
 0x2dc   :  { %vm1292_vm4 = vcmp.gt.f32.partialorder %v1675_v35, 0.0  ;;  %v1294_v39 = vmul.f32 0.2, %v1675_v35 }
 0x2dd   :  { %v1295_v40 = vsel %vm1291_vm3, %v1674_v33, %v1293_v37 }
 0x2de   :  { %v1296_v41 = vsel %vm1292_vm4, %v1675_v35, %v1294_v39  ;;  %v1297_v43 = vpack.c.bf16 %v1295_v40, %v1295_v40 }
 0x2df   :  { %v1298_v42 = vpack.c.bf16 %v1296_v41, %v1296_v41 }
 0x2e1   :  { %1466 = vmatprep.mubr.bf16.mxu1 %v1298_v42 }
 0x2e2   :  { %1467 = vmatmul.mubr.bf16.vlgmr.msra.gmra.mrb[8].mxu1 %v1297_v43 }
 0x3b5   :  { %v1668_v20 = vpop.f32.mrb[8].mxu1 }
 0x3b6   :  { %v1669_v21 = vpop.f32.mrb[9].mxu1 }
 0x3b7   :  { %v1670_v44 = vadd.f32 %v1669_v21, %v1668_v20  ;;  %v1671_v45 = vpop.f32.mrb[10].mxu1 }
 0x3b8   :  { %v1672_v46 = vpop.f32.mrb[11].mxu1 }
 0x3b9   :  { %v1469_v47 = vadd.f32 %v1670_v44, %v1635_v57 }
 0x3bb   :  { %v1474_v48 = vsub.f32 0.0, %v1469_v47 }
 0x3bd   :  { %v1475_v49 = vmul.f32 1.442695, %v1474_v48 }
 0x3bf   :  { %1906 = vpow2.f32 %v1475_v49 }
 0x3c9   :  { %v1907_v50 = vpop.eup %1906 }
 0x3ca   :  { %v1477_v51 = vadd.f32 1.0, %v1907_v50 }
 0x3cc   :  { %1908 = vrcp.f32 %v1477_v51 }
 0x3d6   :  { %v1909_v52 = vpop.eup %1908 }
 0x3d7   :  { %1480 = vst [vmem:[#allocation12] sm:$0x3] %v1909_v52 }
 0x3d8   :  { %2031 = shalt.err (!%p2028_p2)
}
 0x3d9   :  { %s2032_s13 = scalar_lea.hbm %s2260_s9, 32 }
 0x3da   :  { %p2033_p3 = scmp.ne.s32.totalorder %s2260_s9, %s2032_s13  ;;  %p2036_p4 = scmp.lt.u32.totalorder %s2032_s13, %s2260_s9 }
 0x3dc   :  { %p2038_p5 = pnand %p2036_p4, %p2033_p3 }
 0x3de   :  { %2041 = shalt.err (!%p2038_p5)
}
 0x3df   :  { %1490 = dma.vmem_to_hbm [thread:$0]  %s1488_s12, 32, %s2260_s9, [#allocation5]  }
 0x3e0   :  { %2048 = dma.done.wait [#allocation5], 32  }
 0x3e1   :  { %2049 = vsyncadd [#allocation5], 4294967264 }
 0x3e2   :  { %1494 = vsyncpa [#allocation4], 1 }
 0x3e3   :  { %1495 = vsyncpa [#allocation7], 1 }
 0x3e4   :  { %1496 = vsyncpa [#allocation10], 1 }
 0x3e5   :  { %1497 = vsyncpa [#allocation5], 1 }

</bundles_post_ra>
